<compile_context>
chip_gen: v7x
topology: tpu7x:2x2x1
jax: 0.10.0
libtpu: 0.0.40
codegen_flags: <defaults>
</compile_context>

<pallas_src>
import functools
import math

import jax
import jax.numpy as jnp
from jax import lax
from jax.experimental import pallas as pl
from jax.experimental.pallas import tpu as pltpu


def _round_up(x, m):
    return ((x + m - 1) // m) * m


def _chip_defaults():
    """Per-generation tuning (parts / VMEM budgets), per the perf review."""
    try:
        kind = jax.devices()[0].device_kind.lower()
    except Exception:
        kind = ""
    if "7" in kind:
        # v7x: 2 TensorCores/chip, but only 64 MiB VMEM (32 MiB scoped default).
        return dict(num_parts=2,
                    vmem_budget_bytes=24 * 1024 * 1024,
                    vmem_limit_bytes=32 * 1024 * 1024)
    # v5e / v6e (and other single-TC chips, 128 MiB VMEM): bigger blocks, no
    # parts split (a "parallel" parts axis would just be a serial loop).
    return dict(num_parts=1,
                vmem_budget_bytes=40 * 1024 * 1024,
                vmem_limit_bytes=64 * 1024 * 1024)


def _dice_partial_kernel(p_ref, t_ref, num_ref, pts_ref, *, nchunks, unroll,
                         tile_d, d_cols, parts, need_mask):
    """Accumulate lane-wide partial sums of p*t and p+t over the D grid axis."""
    k = pl.program_id(2)

    @pl.when(k == 0)
    def _init():
        num_ref[...] = jnp.zeros_like(num_ref)
        pts_ref[...] = jnp.zeros_like(pts_ref)

    rows = num_ref.shape[0]
    zero = jnp.zeros((rows, 128), jnp.float32)

    if need_mask:
        pi = pl.program_id(1)
        # Unclamped global column offset of this tile; for phantom (clamped)
        # tiles this is >= d_cols so every lane gets masked out.
        tile_start = (k * parts + pi) * tile_d
        valid_cols = d_cols - tile_start
        lane = lax.broadcasted_iota(jnp.int32, (rows, 128), 1)  # hoisted

    def body(c, carry):
        s_num, s_pt = carry
        off = pl.multiple_of(c * 128, 128)
        ps = p_ref[:, pl.ds(off, 128)].astype(jnp.float32)
        ts = t_ref[:, pl.ds(off, 128)].astype(jnp.float32)
        if need_mask:
            msk = (lane + off) < valid_cols
            ps = jnp.where(msk, ps, 0.0)
            ts = jnp.where(msk, ts, 0.0)
        return (s_num + ps * ts, s_pt + (ps + ts))

    s_num, s_pt = lax.fori_loop(0, nchunks, body, (zero, zero), unroll=unroll)
    num_ref[...] += s_num
    pts_ref[...] += s_pt


def binary_dice_loss(predict, target, *, smooth=1.0, p=2, reduction="mean",
                     num_parts=None, vmem_budget_bytes=None,
                     vmem_limit_bytes=None, max_row_block=256,
                     max_block_elems=2 * 1024 * 1024):
    # NOTE: `p` and `reduction` are accepted for signature parity with the torch
    # module, but (exactly like the reference forward) they are unused.
    assert predict.shape[0] == target.shape[0], (
        "predict & target batch size don't match")

    defaults = _chip_defaults()
    if num_parts is None:
        num_parts = defaults["num_parts"]
    if vmem_budget_bytes is None:
        vmem_budget_bytes = defaults["vmem_budget_bytes"]
    if vmem_limit_bytes is None:
        vmem_limit_bytes = defaults["vmem_limit_bytes"]

    n = predict.shape[0]
    pred2d = predict.reshape(n, -1)            # native dtype: no f32 upcast copy
    targ2d = target.reshape(n, -1)
    d = pred2d.shape[1]
    assert targ2d.shape[1] == d, "predict & target flattened size mismatch"

    # --- dtype-aware sublane packing: fold D into rows to fill packed vregs --
    min_item = min(pred2d.dtype.itemsize, targ2d.dtype.itemsize)
    sub_mult = max(8, 32 // max(1, min_item))   # 8 f32, 16 bf16, 32 int8/fp8
    r = 1
    for mult in (sub_mult, 8):
        cand = mult // math.gcd(n, mult)
        if d % cand == 0:
            r = cand
            break
    rows = n * r
    d_cols = d // r
    pred_rows = pred2d.reshape(rows, d_cols)    # contiguous reshape: free
    targ_rows = targ2d.reshape(rows, d_cols)

    # --- row tiling: bound accumulator vregs / VMEM for any N ----------------
    if rows <= max_row_block:
        row_block = rows
    else:
        row_block = max(8, (max_row_block // 8) * 8)
    row_tiles = pl.cdiv(rows, row_block)
    rows_padded = row_tiles * row_block         # pads only the tiny f32 outputs

    # --- VMEM-budgeted, 128-aligned D tile (no hard 32768 cap) ---------------
    itemsize_sum = pred_rows.dtype.itemsize + targ_rows.dtype.itemsize
    tile_max = vmem_budget_bytes // (2 * row_block * itemsize_sum)
    tile_max = min(tile_max, max_block_elems // row_block)
    tile_max = max(128, (tile_max // 128) * 128)
    tile_d = min(tile_max, _round_up(d_cols, 128))

    # --- interleave tiles across `parts` (v7x 2 TCs); no padding in HBM ------
    total_tiles = pl.cdiv(d_cols, tile_d)
    parts = num_parts if (total_tiles >= 2 and num_parts > 1) else 1
    tiles_per_part = pl.cdiv(total_tiles, parts)
    has_phantom = tiles_per_part * parts != total_tiles
    need_mask = (d_cols % tile_d != 0) or has_phantom
    last_tile = total_tiles - 1

    nchunks = tile_d // 128
    unroll = max(2, min(8, 32 // max(1, row_block // 8)))
    unroll = max(1, min(unroll, nchunks))

    kernel = functools.partial(
        _dice_partial_kernel, nchunks=nchunks, unroll=unroll, tile_d=tile_d,
        d_cols=d_cols, parts=parts, need_mask=need_mask)

    acc_shape = jax.ShapeDtypeStruct((parts, rows_padded, 128), jnp.float32)
    if has_phantom:
        # Clamp phantom tiles to a valid block; their contribution is masked to
        # zero in the kernel (valid_cols <= 0 there).
        in_map = lambda ri, pi, k: (ri, jnp.minimum(k * parts + pi, last_tile))
    else:
        in_map = lambda ri, pi, k: (ri, k * parts + pi)
    out_map = lambda ri, pi, k: (pi, ri, 0)

    num_l, pts_l = pl.pallas_call(
        kernel,
        out_shape=(acc_shape, acc_shape),
        grid_spec=pltpu.PrefetchScalarGridSpec(
            num_scalar_prefetch=0,
            grid=(row_tiles, parts, tiles_per_part),
            in_specs=[
                pl.BlockSpec((row_block, tile_d), in_map),
                pl.BlockSpec((row_block, tile_d), in_map),
            ],
            out_specs=[
                pl.BlockSpec((None, row_block, 128), out_map),
                pl.BlockSpec((None, row_block, 128), out_map),
            ],
        ),
        compiler_params=pltpu.CompilerParams(
            dimension_semantics=("parallel", "parallel", "arbitrary"),
            vmem_limit_bytes=vmem_limit_bytes,
        ),
    )(pred_rows, targ_rows)

    # --- tiny finalize in plain JAX (dice formula + mask + mean) -------------
    num = num_l[:, :rows, :].sum(axis=(0, 2)).reshape(n, r).sum(axis=1)
    pts = pts_l[:, :rows, :].sum(axis=(0, 2)).reshape(n, r).sum(axis=1)
    den = pts + jnp.float32(smooth)
    dice_loss = 1.0 - 2.0 * num / den
    valid = targ2d[:, 0].astype(jnp.float32) != -1.0
    count = jnp.sum(valid.astype(jnp.float32))
    # NOTE: matches torch semantics — if no row is valid this is 0/0 (NaN).
    return jnp.sum(jnp.where(valid, dice_loss, 0.0)) / count


def _reference(predict, target, smooth=1.0):
    n = predict.shape[0]
    p2 = predict.reshape(n, -1).astype(jnp.float32)
    t2 = target.reshape(n, -1).astype(jnp.float32)
    num = jnp.sum(p2 * t2, axis=1)
    den = jnp.sum(p2, axis=1) + jnp.sum(t2, axis=1) + smooth
    dice_loss = 1.0 - 2.0 * num / den
    valid = t2[:, 0] != -1
    return jnp.sum(jnp.where(valid, dice_loss, 0.0)) / jnp.sum(valid)


if __name__ == "__main__":
    key = jax.random.PRNGKey(0)
    kp, kt, kp2, kt2, kp3, kt3, kp4, kt4 = jax.random.split(key, 8)

    # Test 1: NCHW f32 (2, 4, 16, 16), all rows valid, aligned fast path.
    predict = jax.nn.sigmoid(
        jax.random.normal(kp, (2, 4, 16, 16), dtype=jnp.float32))
    target = (jax.random.uniform(kt, (2, 4, 16, 16)) > 0.5).astype(jnp.float32)
    loss = jax.block_until_ready(binary_dice_loss(predict, target, smooth=1.0))
    ref = _reference(predict, target, smooth=1.0)
    assert jnp.allclose(loss, ref, rtol=1e-5, atol=1e-5), (loss, ref)

    # Test 2: bf16 predictions, non-128-aligned D (in-kernel ragged-tile mask,
    # no jnp.pad), and one masked-out row.
    predict2 = jax.nn.sigmoid(
        jax.random.normal(kp2, (2, 3, 10, 10), dtype=jnp.float32)
    ).astype(jnp.bfloat16)
    target2 = (jax.random.uniform(kt2, (2, 3, 10, 10)) > 0.5).astype(jnp.float32)
    target2 = target2.at[0, 0, 0, 0].set(-1.0)   # row 0 -> invalid
    loss2 = jax.block_until_ready(binary_dice_loss(predict2, target2, smooth=1.0))
    ref2 = _reference(predict2, target2, smooth=1.0)
    assert jnp.allclose(loss2, ref2, rtol=1e-4, atol=1e-4), (loss2, ref2)

    # Test 3: multi-tile + 2 interleaved parts with a phantom (clamped) tile,
    # forced via a tiny VMEM budget — exercises the no-pad ragged handling.
    predict3 = jax.nn.sigmoid(
        jax.random.normal(kp3, (2, 3, 37, 29), dtype=jnp.float32))
    target3 = (jax.random.uniform(kt3, (2, 3, 37, 29)) > 0.5).astype(jnp.float32)
    loss3 = jax.block_until_ready(binary_dice_loss(
        predict3, target3, smooth=1.0, num_parts=2,
        vmem_budget_bytes=48 * 1024))
    ref3 = _reference(predict3, target3, smooth=1.0)
    assert jnp.allclose(loss3, ref3, rtol=1e-5, atol=1e-5), (loss3, ref3)

    # Test 4: row tiling (partial last row block) with a small row cap.
    predict4 = jax.nn.sigmoid(
        jax.random.normal(kp4, (20, 7, 9), dtype=jnp.float32))
    target4 = (jax.random.uniform(kt4, (20, 7, 9)) > 0.5).astype(jnp.float32)
    target4 = target4.at[3, 0, 0].set(-1.0)      # row 3 -> invalid
    loss4 = jax.block_until_ready(binary_dice_loss(
        predict4, target4, smooth=1.0, max_row_block=8))
    ref4 = _reference(predict4, target4, smooth=1.0)
    assert jnp.allclose(loss4, ref4, rtol=1e-5, atol=1e-5), (loss4, ref4)

    print("KERNEL_OK")
</pallas_src>

<mosaic_0001>
module attributes {stable_mosaic.version = 11 : i64} {
  func.func @_dice_partial_kernel(%arg0: i32, %arg1: i32, %arg2: i32, %arg3: memref<8x256xf32, #tpu.memory_space<vmem>>, %arg4: memref<8x256xf32, #tpu.memory_space<vmem>>, %arg5: memref<1x8x128xf32, #tpu.memory_space<vmem>>, %arg6: memref<1x8x128xf32, #tpu.memory_space<vmem>>) attributes {dimension_semantics = [#tpu.dimension_semantics<parallel>, #tpu.dimension_semantics<parallel>, #tpu.dimension_semantics<arbitrary>], iteration_bounds = array<i64: 1, 1, 1>, scalar_prefetch = 0 : i64, scratch_operands = 0 : i64, tpu.core_type = #tpu.core_type<tc>, window_params = [{transform_indices = @transform_0, window_bounds = array<i64: 8, 256>}, {transform_indices = @transform_1, window_bounds = array<i64: 8, 256>}, {transform_indices = @transform_2, window_bounds = array<i64: 1, 8, 128>}, {transform_indices = @transform_3, window_bounds = array<i64: 1, 8, 128>}]} {
    %c0_i32 = arith.constant 0 : i32
    %0 = arith.cmpi eq, %arg2, %c0_i32 : i32
    %1 = arith.extui %0 : i1 to i32
    %c0_i32_0 = arith.constant 0 : i32
    %2 = arith.cmpi ne, %1, %c0_i32_0 : i32
    scf.if %2 {
      %cst_18 = arith.constant 0.000000e+00 : f32
      %36 = vector.broadcast %cst_18 : f32 to vector<8x128xf32>
      %c0_19 = arith.constant 0 : index
      %c0_20 = arith.constant 0 : index
      %c0_21 = arith.constant 0 : index
      %37 = vector.load %arg5[%c0_19, %c0_20, %c0_21] : memref<1x8x128xf32, #tpu.memory_space<vmem>>, vector<1x8x128xf32>
      %38 = vector.shape_cast %37 : vector<1x8x128xf32> to vector<8x128xf32>
      %39 = vector.shape_cast %36 : vector<8x128xf32> to vector<1x8x128xf32>
      tpu.vector_store %arg5[%c0_19, %c0_20, %c0_21], %39 {strides = array<i32>} : memref<1x8x128xf32, #tpu.memory_space<vmem>>, vector<1x8x128xf32>,
      %cst_22 = arith.constant 0.000000e+00 : f32
      %40 = vector.broadcast %cst_22 : f32 to vector<8x128xf32>
      %c0_23 = arith.constant 0 : index
      %c0_24 = arith.constant 0 : index
      %c0_25 = arith.constant 0 : index
      %41 = vector.load %arg6[%c0_23, %c0_24, %c0_25] : memref<1x8x128xf32, #tpu.memory_space<vmem>>, vector<1x8x128xf32>
      %42 = vector.shape_cast %41 : vector<1x8x128xf32> to vector<8x128xf32>
      %43 = vector.shape_cast %40 : vector<8x128xf32> to vector<1x8x128xf32>
      tpu.vector_store %arg6[%c0_23, %c0_24, %c0_25], %43 {strides = array<i32>} : memref<1x8x128xf32, #tpu.memory_space<vmem>>, vector<1x8x128xf32>,
    } else {
    }
    %cst = arith.constant 0.000000e+00 : f32
    %3 = vector.broadcast %cst : f32 to vector<8x128xf32>
    %c0_i32_1 = arith.constant 0 : i32
    %c128_i32 = arith.constant 128 : i32
    %4 = arith.muli %c0_i32_1, %c128_i32 : i32
    %5 = tpu.assume_multiple %4, 128 : i32
    %c0 = arith.constant 0 : index
    %6 = arith.index_cast %5 : i32 to index
    %7 = vector.load %arg3[%c0, %6] : memref<8x256xf32, #tpu.memory_space<vmem>>, vector<8x128xf32>
    %c0_2 = arith.constant 0 : index
    %8 = arith.index_cast %5 : i32 to index
    %9 = vector.load %arg4[%c0_2, %8] : memref<8x256xf32, #tpu.memory_space<vmem>>, vector<8x128xf32>
    %10 = arith.mulf %7, %9 : vector<8x128xf32>
    %11 = arith.addf %3, %10 : vector<8x128xf32>
    %12 = arith.addf %7, %9 : vector<8x128xf32>
    %13 = arith.addf %3, %12 : vector<8x128xf32>
    %c1_i32 = arith.constant 1 : i32
    %c128_i32_3 = arith.constant 128 : i32
    %14 = arith.muli %c1_i32, %c128_i32_3 : i32
    %15 = tpu.assume_multiple %14, 128 : i32
    %c0_4 = arith.constant 0 : index
    %16 = arith.index_cast %15 : i32 to index
    %17 = vector.load %arg3[%c0_4, %16] : memref<8x256xf32, #tpu.memory_space<vmem>>, vector<8x128xf32>
    %c0_5 = arith.constant 0 : index
    %18 = arith.index_cast %15 : i32 to index
    %19 = vector.load %arg4[%c0_5, %18] : memref<8x256xf32, #tpu.memory_space<vmem>>, vector<8x128xf32>
    %20 = arith.mulf %17, %19 : vector<8x128xf32>
    %21 = arith.addf %11, %20 : vector<8x128xf32>
    %22 = arith.addf %17, %19 : vector<8x128xf32>
    %23 = arith.addf %13, %22 : vector<8x128xf32>
    %c2_i32 = arith.constant 2 : i32
    %c0_6 = arith.constant 0 : index
    %c0_7 = arith.constant 0 : index
    %c0_8 = arith.constant 0 : index
    %24 = vector.load %arg5[%c0_6, %c0_7, %c0_8] : memref<1x8x128xf32, #tpu.memory_space<vmem>>, vector<1x8x128xf32>
    %25 = vector.shape_cast %24 : vector<1x8x128xf32> to vector<8x128xf32>
    %26 = arith.addf %25, %21 : vector<8x128xf32>
    %c0_9 = arith.constant 0 : index
    %c0_10 = arith.constant 0 : index
    %c0_11 = arith.constant 0 : index
    %27 = vector.load %arg5[%c0_9, %c0_10, %c0_11] : memref<1x8x128xf32, #tpu.memory_space<vmem>>, vector<1x8x128xf32>
    %28 = vector.shape_cast %27 : vector<1x8x128xf32> to vector<8x128xf32>
    %29 = vector.shape_cast %26 : vector<8x128xf32> to vector<1x8x128xf32>
    tpu.vector_store %arg5[%c0_9, %c0_10, %c0_11], %29 {strides = array<i32>} : memref<1x8x128xf32, #tpu.memory_space<vmem>>, vector<1x8x128xf32>,
    %c0_12 = arith.constant 0 : index
    %c0_13 = arith.constant 0 : index
    %c0_14 = arith.constant 0 : index
    %30 = vector.load %arg6[%c0_12, %c0_13, %c0_14] : memref<1x8x128xf32, #tpu.memory_space<vmem>>, vector<1x8x128xf32>
    %31 = vector.shape_cast %30 : vector<1x8x128xf32> to vector<8x128xf32>
    %32 = arith.addf %31, %23 : vector<8x128xf32>
    %c0_15 = arith.constant 0 : index
    %c0_16 = arith.constant 0 : index
    %c0_17 = arith.constant 0 : index
    %33 = vector.load %arg6[%c0_15, %c0_16, %c0_17] : memref<1x8x128xf32, #tpu.memory_space<vmem>>, vector<1x8x128xf32>
    %34 = vector.shape_cast %33 : vector<1x8x128xf32> to vector<8x128xf32>
    %35 = vector.shape_cast %32 : vector<8x128xf32> to vector<1x8x128xf32>
    tpu.vector_store %arg6[%c0_15, %c0_16, %c0_17], %35 {strides = array<i32>} : memref<1x8x128xf32, #tpu.memory_space<vmem>>, vector<1x8x128xf32>,
    return
  }
  func.func @transform_0(%arg0: i32, %arg1: i32, %arg2: i32) -> (i32, i32) {
    %c1_i32 = arith.constant 1 : i32
    %0 = arith.muli %arg2, %c1_i32 : i32
    %1 = arith.addi %0, %arg1 : i32
    %c0_i32 = arith.constant 0 : i32
    return %arg0, %1 : i32, i32
  }
  func.func @transform_1(%arg0: i32, %arg1: i32, %arg2: i32) -> (i32, i32) {
    %c1_i32 = arith.constant 1 : i32
    %0 = arith.muli %arg2, %c1_i32 : i32
    %1 = arith.addi %0, %arg1 : i32
    %c0_i32 = arith.constant 0 : i32
    return %arg0, %1 : i32, i32
  }
  func.func @transform_2(%arg0: i32, %arg1: i32, %arg2: i32) -> (i32, i32, i32) {
    %c0_i32 = arith.constant 0 : i32
    %c0_i32_0 = arith.constant 0 : i32
    return %arg1, %arg0, %c0_i32 : i32, i32, i32
  }
  func.func @transform_3(%arg0: i32, %arg1: i32, %arg2: i32) -> (i32, i32, i32) {
    %c0_i32 = arith.constant 0 : i32
    %c0_i32_0 = arith.constant 0 : i32
    return %arg1, %arg0, %c0_i32 : i32, i32, i32
  }
}

</mosaic_0001>

<bundles_post_ra>
// kernel: tpu_custom_call.1
= control target key start
LH: loop header
LB: loop body
LE: loop exit
PB: predicated region body
PF: predicated region fallthrough
CT: control target
= control target key end

     0   :  { %9 = vsyncpa [#allocation3], 0  ;;  %s280_s0 = inlined_call_operand.hbm [shape: f32[8,256], index: 0, kind: input, shape index: {}]   ;;  %s281_s1 = inlined_call_operand.hbm [shape: f32[8,256], index: 1, kind: input, shape index: {}]   ;;  %s282_s2 = inlined_call_operand.hbm [shape: f32[1,8,128], index: 2, kind: output, shape index: {0}]   ;;  %s283_s3 = inlined_call_operand.hbm [shape: f32[1,8,128], index: 3, kind: output, shape index: {1}]  }
   0x1   :  { %10 = vsyncpa [#allocation6], 0 }
   0x2   :  { %11 = vsyncpa [#allocation4], 0 }
   0x3   :  { %12 = vsyncpa [#allocation9], 0  ;;  %s208_s12 = smov [#allocation2]   ;;  %s209_s14 = smov [#allocation5]  }
   0x4   :  { %s23_s13 = sshll.u32 %s208_s12, 4  ;;  %s37_s15 = sshll.u32 %s209_s14, 4  ;;  %s24_s13 = int_to_ptr.vmem [resolvable:$true] %s23_s13  ;;  %s38_s15 = int_to_ptr.vmem [resolvable:$true] %s37_s15 }
   0x5   :  { %s112_s18 = scalar_lea.hbm %s280_s0, 256 }
   0x6   :  { %p113_p0 = scmp.ne.s32.totalorder %s280_s0, %s112_s18  ;;  %p116_p1 = scmp.lt.u32.totalorder %s112_s18, %s280_s0 }
   0x8   :  { %p118_p2 = pnand %p116_p1, %p113_p0 }
   0xa   :  { %121 = shalt.err (!%p118_p2)
}
   0xb   :  { %s122_s23 = scalar_lea.vmem %s24_s13, 256  ;;  %p127_p4 = scmp.lt.s32.totalorder %s24_s13, %s24_s13 }
   0xc   :  { %p123_p3 = scmp.ne.s32.totalorder %s24_s13, %s122_s23  ;;  %p128_p5 = scmp.lt.s32.totalorder %s122_s23, %s122_s23 }
   0xe   :  { %p129_p6 = por %p128_p5, %p127_p4 }
  0x10   :  { %p130_p7 = pnand %p129_p6, %p123_p3 }
  0x12   :  { %133 = shalt.err (!%p130_p7)
}
  0x13   :  { %26 = dma.hbm_to_vmem [thread:$0]  %s280_s0, 256, %s24_s13, [#allocation3]  }
  0x14   :  { %s134_s28 = scalar_lea.hbm %s281_s1, 256 }
  0x15   :  { %p135_p8 = scmp.ne.s32.totalorder %s281_s1, %s134_s28  ;;  %p138_p9 = scmp.lt.u32.totalorder %s134_s28, %s281_s1 }
  0x17   :  { %p140_p10 = pnand %p138_p9, %p135_p8 }
  0x19   :  { %143 = shalt.err (!%p140_p10)
}
  0x1a   :  { %s144_s6 = scalar_lea.vmem %s38_s15, 256  ;;  %p149_p12 = scmp.lt.s32.totalorder %s38_s15, %s38_s15 }
  0x1b   :  { %p145_p11 = scmp.ne.s32.totalorder %s38_s15, %s144_s6  ;;  %p150_p13 = scmp.lt.s32.totalorder %s144_s6, %s144_s6 }
  0x1d   :  { %p151_p0 = por %p150_p13, %p149_p12 }
  0x1f   :  { %p152_p1 = pnand %p151_p0, %p145_p11 }
  0x21   :  { %155 = shalt.err (!%p152_p1)
}
  0x22   :  { %40 = dma.hbm_to_vmem [thread:$0]  %s281_s1, 256, %s38_s15, [#allocation6]  }
  0x23   :  { %200 = dma.done.wait [#allocation3], 256  }
  0x24   :  { %201 = vsyncadd [#allocation3], 4294967040 }
  0x25   :  { %202 = dma.done.wait [#allocation6], 256  }
  0x26   :  { %203 = vsyncadd [#allocation6], 4294967040  ;;  %v57_v0 = vld [vmem:[#allocation2] sm:$0xff]  ;;  %v58_v1 = vld [vmem:[#allocation5] sm:$0xff]  ;;  %s210_s8 = smov [#allocation7]   ;;  %s211_s10 = smov [#allocation8]  }
  0x27   :  { %v64_v2 = vld [vmem:[#allocation2 + $0x8] sm:$0xff]  ;;  %v59_v3 = vmul.f32 %v58_v1, %v57_v0  ;;  %v66_v4 = vld [vmem:[#allocation5 + $0x8] sm:$0xff]  ;;  %v61_v5 = vadd.f32 %v58_v1, %v57_v0  ;;  %s83_s9 = sshll.u32 %s210_s8, 4  ;;  %s93_s11 = sshll.u32 %s211_s10, 4  ;;  %s84_s9 = int_to_ptr.vmem [resolvable:$true] %s83_s9  ;;  %s94_s11 = int_to_ptr.vmem [resolvable:$true] %s93_s11 }
  0x28   :  { %v67_v6 = vmul.f32 %v66_v4, %v64_v2  ;;  %v69_v7 = vadd.f32 %v66_v4, %v64_v2  ;;  %s156_s1 = scalar_lea.vmem %s84_s9, 128  ;;  %p161_p3 = scmp.lt.s32.totalorder %s84_s9, %s84_s9 }
  0x29   :  { %p157_p2 = scmp.ne.s32.totalorder %s84_s9, %s156_s1  ;;  %p162_p4 = scmp.lt.s32.totalorder %s156_s1, %s156_s1 }
  0x2a   :  { %v68_v8 = vadd.f32 %v67_v6, %v59_v3  ;;  %v70_v9 = vadd.f32 %v69_v7, %v61_v5 }
  0x2b   :  { %p163_p5 = por %p162_p4, %p161_p3 }
  0x2c   :  { %73 = vst [vmem:[#allocation7] sm:$0xff] %v68_v8  ;;  %76 = vst [vmem:[#allocation8] sm:$0xff] %v70_v9 }
  0x2d   :  { %p164_p6 = pnand %p163_p5, %p157_p2 }
  0x2f   :  { %167 = shalt.err (!%p164_p6)
}
  0x30   :  { %s168_s14 = scalar_lea.hbm %s282_s2, 128 }
  0x31   :  { %p169_p7 = scmp.ne.s32.totalorder %s282_s2, %s168_s14  ;;  %p172_p8 = scmp.lt.u32.totalorder %s168_s14, %s282_s2 }
  0x33   :  { %p174_p9 = pnand %p172_p8, %p169_p7 }
  0x35   :  { %177 = shalt.err (!%p174_p9)
}
  0x36   :  { %86 = dma.vmem_to_hbm [thread:$0]  %s84_s9, 128, %s282_s2, [#allocation4]  }
  0x37   :  { %s178_s21 = scalar_lea.vmem %s94_s11, 128  ;;  %p183_p11 = scmp.lt.s32.totalorder %s94_s11, %s94_s11 }
  0x38   :  { %p179_p10 = scmp.ne.s32.totalorder %s94_s11, %s178_s21  ;;  %p184_p12 = scmp.lt.s32.totalorder %s178_s21, %s178_s21 }
  0x3a   :  { %p185_p13 = por %p184_p12, %p183_p11 }
  0x3c   :  { %p186_p0 = pnand %p185_p13, %p179_p10 }
  0x3e   :  { %189 = shalt.err (!%p186_p0)
}
  0x3f   :  { %s190_s24 = scalar_lea.hbm %s283_s3, 128 }
  0x40   :  { %p191_p1 = scmp.ne.s32.totalorder %s283_s3, %s190_s24  ;;  %p194_p2 = scmp.lt.u32.totalorder %s190_s24, %s283_s3 }
  0x42   :  { %p196_p3 = pnand %p194_p2, %p191_p1 }
  0x44   :  { %199 = shalt.err (!%p196_p3)
}
  0x45   :  { %96 = dma.vmem_to_hbm [thread:$0]  %s94_s11, 128, %s283_s3, [#allocation9]  }
  0x46   :  { %204 = dma.done.wait [#allocation4], 128  }
  0x47   :  { %205 = vsyncadd [#allocation4], 4294967168 }
  0x48   :  { %206 = dma.done.wait [#allocation9], 128  }
  0x49   :  { %207 = vsyncadd [#allocation9], 4294967168 }
  0x4a   :  { %103 = vsyncpa [#allocation3], 1 }
  0x4b   :  { %104 = vsyncpa [#allocation6], 1 }
  0x4c   :  { %105 = vsyncpa [#allocation4], 1 }
  0x4d   :  { %106 = vsyncpa [#allocation9], 1 }

</bundles_post_ra>
